<compile_context>
chip_gen: v5e
topology: v5e:2x2
jax: 0.10.0
libtpu: 0.0.40
codegen_flags: <defaults>
</compile_context>

<pallas_src>
import jax
import jax.numpy as jnp
from jax.experimental import pallas as pl
from jax.experimental.pallas import tpu as pltpu


def _attn_pool_kernel(x_ref, w_ref, o_ref, m_sc, l_sc, acc_sc):
    # x_ref: (TB, TT, D) VMEM   w_ref: (1, D) VMEM (same dtype as x)
    # o_ref: (TB, D)            scratch: m/l (TB, 1) f32, acc (TB, D) f32
    j = pl.program_id(1)

    @pl.when(j == 0)
    def _init():
        m_sc[...] = jnp.full_like(m_sc, -jnp.inf)
        l_sc[...] = jnp.zeros_like(l_sc)
        acc_sc[...] = jnp.zeros_like(acc_sc)

    x = x_ref[...]                                   # (TB, TT, D), native dtype
    w_row = w_ref[...]                               # (1, D), native dtype

    # scores[b, t] = sum_d x[b,t,d] * w[d]: multiply in the input dtype (no
    # full-tile f32 copy), accumulate the lane reduction in f32.  The Linear
    # bias is a constant shift over T and therefore a softmax no-op — dropped.
    scores = jnp.sum(x * w_row, axis=-1, dtype=jnp.float32)   # (TB, TT), lane-dense

    # ---- online softmax update over this T tile ----
    m_tile = jnp.max(scores, axis=-1, keepdims=True)          # (TB, 1)
    m_new = jnp.maximum(m_sc[...], m_tile)                    # (TB, 1)
    alpha = jnp.exp(m_sc[...] - m_new)                        # rescale old stats
    p = jnp.exp(scores - m_new)                               # (TB, TT) f32, unnormalized

    l_sc[...] = alpha * l_sc[...] + jnp.sum(p, axis=-1, keepdims=True)

    # Weighted sum on the MXU: per batch row a (1, TT) @ (TT, D) contraction,
    # accumulated in f32.  This keeps p in its cheap lane-dense layout and
    # removes the per-element VPU multiply + axis=1 adds of the old path.
    pb = p.astype(x.dtype)[:, None, :]                        # (TB, 1, TT)
    upd = jnp.einsum("bqt,btd->bqd", pb, x,
                     preferred_element_type=jnp.float32)      # (TB, 1, D)
    acc_sc[...] = alpha * acc_sc[...] + upd[:, 0, :]
    m_sc[...] = m_new

    @pl.when(j == pl.num_programs(1) - 1)
    def _finalize():
        # Deferred normalization: one exact reciprocal per batch tile.
        inv_l = pl.reciprocal(l_sc[...], approx=False)        # (TB, 1)
        o_ref[...] = (acc_sc[...] * inv_l).astype(o_ref.dtype)


def _tpu_vmem_capacity_bytes():
    try:
        return int(pltpu.get_tpu_info().vmem_capacity_bytes)
    except Exception:
        return None


def _pick_batch_tile(B):
    # Output block's second-to-last dim must be a multiple of 8 or the full B.
    if B > 8 and B % 8 == 0:
        return 8
    return B


def _pick_seq_tile(T, row_bytes, budget_bytes):
    # x block's second-to-last dim must be a multiple of 8 or the full T.
    if T <= 8:
        return T
    target = max(8, budget_bytes // max(row_bytes, 1))
    target = min(T, (target // 8) * 8)
    for cand in range(target, 7, -8):
        if T % cand == 0:
            return cand
    return T  # no multiple-of-8 divisor of T; fall back to the full sequence


def attention_pooling(x, w, b=None, *, tb=None, tt=None):
    """x: (B, T, D); w: (D, 1) (nn.Linear(input_dim, 1).weight transposed);
    b: (1,) accepted for API parity but unused (softmax-invariant).
    Returns (B, D) = sum_t softmax_t(x @ w + b)_t * x_t."""
    del b  # constant shift over the softmax axis -> no effect on the output
    B, T, D = x.shape

    # Generation-aware block budget / scoped-VMEM raise / pipeline depth.
    vmem_cap = _tpu_vmem_capacity_bytes()
    if vmem_cap is None:                     # unknown: conservative defaults
        budget, vmem_limit, nbuf = 2 << 20, None, 2
    elif vmem_cap <= (96 << 20):             # v7x-class (64 MiB per TensorCore)
        budget, vmem_limit, nbuf = 4 << 20, 48 << 20, 3
    else:                                    # v5e / v6e (128 MiB physical)
        budget, vmem_limit, nbuf = 8 << 20, 64 << 20, 2

    if tb is None:
        tb = _pick_batch_tile(B)
    if tt is None:
        tt = _pick_seq_tile(T, row_bytes=tb * D * x.dtype.itemsize,
                            budget_bytes=budget)
    assert B % tb == 0 and T % tt == 0, (B, tb, T, tt)

    w_row = jnp.asarray(w).reshape(1, D).astype(x.dtype)   # lane-dense weight row

    x_block = (tb, tt, D)
    x_index = lambda i, j: (i, j, 0)
    if nbuf > 2:
        try:
            x_spec = pl.BlockSpec(x_block, x_index, pipeline_mode=pl.Buffered(nbuf))
        except TypeError:
            x_spec = pl.BlockSpec(x_block, x_index)
    else:
        x_spec = pl.BlockSpec(x_block, x_index)

    cp_kwargs = dict(dimension_semantics=("parallel", "arbitrary"))
    if vmem_limit is not None:
        cp_kwargs["vmem_limit_bytes"] = int(vmem_limit)

    return pl.pallas_call(
        _attn_pool_kernel,
        out_shape=jax.ShapeDtypeStruct((B, D), x.dtype),
        grid_spec=pltpu.PrefetchScalarGridSpec(
            num_scalar_prefetch=0,
            grid=(B // tb, T // tt),
            in_specs=[
                x_spec,                                          # x tile (streamed)
                pl.BlockSpec((1, D), lambda i, j: (0, 0)),       # weight row
            ],
            out_specs=pl.BlockSpec((tb, D), lambda i, j: (i, 0)),
            scratch_shapes=[
                pltpu.VMEM((tb, 1), jnp.float32),   # running max  m
                pltpu.VMEM((tb, 1), jnp.float32),   # running sum  l
                pltpu.VMEM((tb, D), jnp.float32),   # running weighted sum
            ],
        ),
        compiler_params=pltpu.CompilerParams(**cp_kwargs),
    )(x, w_row)


def attention_pooling_ref(x, w, b):
    # pure-JAX reference mirroring the PyTorch module (bias included)
    scores = jnp.einsum("btd,do->bto", x, w) + b          # (B, T, 1)
    weights = jax.nn.softmax(scores, axis=1)              # softmax over T
    return jnp.sum(x * weights, axis=1)                   # (B, D)


if __name__ == "__main__":
    # Case 1: small shapes matching the module's demo regime (single tile).
    B, T, D = 2, 8, 32
    kx, kw, kb = jax.random.split(jax.random.PRNGKey(0), 3)
    x = jax.random.normal(kx, (B, T, D), dtype=jnp.float32)
    w = (jax.random.uniform(kw, (D, 1), dtype=jnp.float32) - 0.5) * (2.0 / jnp.sqrt(D))
    b = (jax.random.uniform(kb, (1,), dtype=jnp.float32) - 0.5) * (2.0 / jnp.sqrt(D))

    out = jax.block_until_ready(attention_pooling(x, w, b))
    ref = attention_pooling_ref(x, w, b)
    assert out.shape == (B, D)
    assert jnp.allclose(out, ref, atol=1e-5, rtol=1e-5), "mismatch (single tile)"

    # Case 2: exercise the tiled-T online-softmax + MXU path (4 sequence tiles).
    B2, T2, D2 = 4, 256, 128
    kx2, kw2, kb2 = jax.random.split(jax.random.PRNGKey(1), 3)
    x2 = jax.random.normal(kx2, (B2, T2, D2), dtype=jnp.float32)
    w2 = (jax.random.uniform(kw2, (D2, 1), dtype=jnp.float32) - 0.5) * (2.0 / jnp.sqrt(D2))
    b2 = (jax.random.uniform(kb2, (1,), dtype=jnp.float32) - 0.5) * (2.0 / jnp.sqrt(D2))

    out2 = jax.block_until_ready(attention_pooling(x2, w2, b2, tt=64))
    ref2 = attention_pooling_ref(x2, w2, b2)
    assert jnp.allclose(out2, ref2, atol=1e-4, rtol=1e-4), "mismatch (multi tile)"

    print("KERNEL_OK")
</pallas_src>

<mosaic_0001>
module attributes {stable_mosaic.version = 11 : i64} {
  func.func @_attn_pool_kernel(%arg0: i32, %arg1: i32, %arg2: memref<2x8x32xf32, #tpu.memory_space<vmem>>, %arg3: memref<1x32xf32, #tpu.memory_space<vmem>>, %arg4: memref<2x32xf32, #tpu.memory_space<vmem>>, %arg5: memref<2x1xf32, #tpu.memory_space<vmem>>, %arg6: memref<2x1xf32, #tpu.memory_space<vmem>>, %arg7: memref<2x32xf32, #tpu.memory_space<vmem>>) attributes {dimension_semantics = [#tpu.dimension_semantics<parallel>, #tpu.dimension_semantics<arbitrary>], iteration_bounds = array<i64: 1, 1>, scalar_prefetch = 0 : i64, scratch_operands = 3 : i64, tpu.core_type = #tpu.core_type<tc>, window_params = [{transform_indices = @transform_0, window_bounds = array<i64: 2, 8, 32>}, {pipeline_mode = #tpu.pipeline_mode<synchronous>, transform_indices = @transform_1, window_bounds = array<i64: 1, 32>}, {transform_indices = @transform_2, window_bounds = array<i64: 2, 32>}]} {
    %c0_i32 = arith.constant 0 : i32
    %0 = arith.cmpi eq, %arg1, %c0_i32 : i32
    %1 = arith.extui %0 : i1 to i32
    %c0_i32_0 = arith.constant 0 : i32
    %2 = arith.cmpi ne, %1, %c0_i32_0 : i32
    scf.if %2 {
      %cst_24 = arith.constant 0xFF800000 : f32
      %37 = vector.broadcast %cst_24 : f32 to vector<2x1xf32>
      %c0_25 = arith.constant 0 : index
      %c0_26 = arith.constant 0 : index
      %38 = vector.load %arg5[%c0_25, %c0_26] : memref<2x1xf32, #tpu.memory_space<vmem>>, vector<2x1xf32>
      tpu.vector_store %arg5[%c0_25, %c0_26], %37 {strides = array<i32>} : memref<2x1xf32, #tpu.memory_space<vmem>>, vector<2x1xf32>,
      %cst_27 = arith.constant 0.000000e+00 : f32
      %39 = vector.broadcast %cst_27 : f32 to vector<2x1xf32>
      %c0_28 = arith.constant 0 : index
      %c0_29 = arith.constant 0 : index
      %40 = vector.load %arg6[%c0_28, %c0_29] : memref<2x1xf32, #tpu.memory_space<vmem>>, vector<2x1xf32>
      tpu.vector_store %arg6[%c0_28, %c0_29], %39 {strides = array<i32>} : memref<2x1xf32, #tpu.memory_space<vmem>>, vector<2x1xf32>,
      %cst_30 = arith.constant 0.000000e+00 : f32
      %41 = vector.broadcast %cst_30 : f32 to vector<2x32xf32>
      %c0_31 = arith.constant 0 : index
      %c0_32 = arith.constant 0 : index
      %42 = vector.load %arg7[%c0_31, %c0_32] : memref<2x32xf32, #tpu.memory_space<vmem>>, vector<2x32xf32>
      tpu.vector_store %arg7[%c0_31, %c0_32], %41 {strides = array<i32>} : memref<2x32xf32, #tpu.memory_space<vmem>>, vector<2x32xf32>,
    } else {
    }
    %c0 = arith.constant 0 : index
    %c0_1 = arith.constant 0 : index
    %c0_2 = arith.constant 0 : index
    %3 = vector.load %arg2[%c0, %c0_1, %c0_2] : memref<2x8x32xf32, #tpu.memory_space<vmem>>, vector<2x8x32xf32>
    %c0_3 = arith.constant 0 : index
    %c0_4 = arith.constant 0 : index
    %4 = vector.load %arg3[%c0_3, %c0_4] : memref<1x32xf32, #tpu.memory_space<vmem>>, vector<1x32xf32>
    %5 = vector.shape_cast %4 : vector<1x32xf32> to vector<1x1x32xf32>
    %6 = vector.broadcast %5 : vector<1x1x32xf32> to vector<2x8x32xf32>
    %7 = arith.mulf %3, %6 : vector<2x8x32xf32>
    %cst = arith.constant dense<0.000000e+00> : vector<2x8xf32>
    %8 = vector.multi_reduction <add>, %7, %cst [2] : vector<2x8x32xf32> to vector<2x8xf32>
    %cst_5 = arith.constant dense<0xFF800000> : vector<2xf32>
    %9 = vector.multi_reduction <maximumf>, %8, %cst_5 [1] : vector<2x8xf32> to vector<2xf32>
    %10 = vector.shape_cast %9 : vector<2xf32> to vector<2x1xf32>
    %c0_6 = arith.constant 0 : index
    %c0_7 = arith.constant 0 : index
    %11 = vector.load %arg5[%c0_6, %c0_7] : memref<2x1xf32, #tpu.memory_space<vmem>>, vector<2x1xf32>
    %12 = arith.maximumf %11, %10 : vector<2x1xf32>
    %c0_8 = arith.constant 0 : index
    %c0_9 = arith.constant 0 : index
    %13 = vector.load %arg5[%c0_8, %c0_9] : memref<2x1xf32, #tpu.memory_space<vmem>>, vector<2x1xf32>
    %14 = arith.subf %13, %12 : vector<2x1xf32>
    %15 = math.exp %14 : vector<2x1xf32>
    %16 = vector.broadcast %12 : vector<2x1xf32> to vector<2x8xf32>
    %17 = arith.subf %8, %16 : vector<2x8xf32>
    %18 = math.exp %17 : vector<2x8xf32>
    %c0_10 = arith.constant 0 : index
    %c0_11 = arith.constant 0 : index
    %19 = vector.load %arg6[%c0_10, %c0_11] : memref<2x1xf32, #tpu.memory_space<vmem>>, vector<2x1xf32>
    %20 = arith.mulf %15, %19 : vector<2x1xf32>
    %cst_12 = arith.constant dense<0.000000e+00> : vector<2xf32>
    %21 = vector.multi_reduction <add>, %18, %cst_12 [1] : vector<2x8xf32> to vector<2xf32>
    %22 = vector.shape_cast %21 : vector<2xf32> to vector<2x1xf32>
    %23 = arith.addf %20, %22 : vector<2x1xf32>
    %c0_13 = arith.constant 0 : index
    %c0_14 = arith.constant 0 : index
    %24 = vector.load %arg6[%c0_13, %c0_14] : memref<2x1xf32, #tpu.memory_space<vmem>>, vector<2x1xf32>
    tpu.vector_store %arg6[%c0_13, %c0_14], %23 {strides = array<i32>} : memref<2x1xf32, #tpu.memory_space<vmem>>, vector<2x1xf32>,
    %25 = vector.shape_cast %18 : vector<2x8xf32> to vector<2x1x8xf32>
    "tpu.trace_start"() <{level = 10 : i32, message = "bqt,btd->bqd"}> : () -> ()
    %cst_15 = arith.constant dense<0.000000e+00> : vector<2x1x32xf32>
    %26 = tpu.matmul %25, %3, %cst_15 {dimension_numbers = #tpu.dot_dimension_numbers<[2], [1], [1], [2], [0, 0, 0, 1, 1, 2], [0], [0]>} : vector<2x1x8xf32>, vector<2x8x32xf32>, vector<2x1x32xf32> -> vector<2x1x32xf32>
    "tpu.trace_stop"() : () -> ()
    %c0_16 = arith.constant 0 : index
    %c0_17 = arith.constant 0 : index
    %27 = vector.load %arg7[%c0_16, %c0_17] : memref<2x32xf32, #tpu.memory_space<vmem>>, vector<2x32xf32>
    %28 = vector.broadcast %15 : vector<2x1xf32> to vector<2x32xf32>
    %29 = arith.mulf %28, %27 : vector<2x32xf32>
    %30 = vector.shape_cast %26 : vector<2x1x32xf32> to vector<2x32xf32>
    %31 = arith.addf %29, %30 : vector<2x32xf32>
    %c0_18 = arith.constant 0 : index
    %c0_19 = arith.constant 0 : index
    %32 = vector.load %arg7[%c0_18, %c0_19] : memref<2x32xf32, #tpu.memory_space<vmem>>, vector<2x32xf32>
    tpu.vector_store %arg7[%c0_18, %c0_19], %31 {strides = array<i32>} : memref<2x32xf32, #tpu.memory_space<vmem>>, vector<2x32xf32>,
    %c0_20 = arith.constant 0 : index
    %c0_21 = arith.constant 0 : index
    %33 = vector.load %arg5[%c0_20, %c0_21] : memref<2x1xf32, #tpu.memory_space<vmem>>, vector<2x1xf32>
    tpu.vector_store %arg5[%c0_20, %c0_21], %12 {strides = array<i32>} : memref<2x1xf32, #tpu.memory_space<vmem>>, vector<2x1xf32>,
    %c0_i32_22 = arith.constant 0 : i32
    %34 = arith.cmpi eq, %arg1, %c0_i32_22 : i32
    %35 = arith.extui %34 : i1 to i32
    %c0_i32_23 = arith.constant 0 : i32
    %36 = arith.cmpi ne, %35, %c0_i32_23 : i32
    scf.if %36 {
      %c0_24 = arith.constant 0 : index
      %c0_25 = arith.constant 0 : index
      %37 = vector.load %arg6[%c0_24, %c0_25] : memref<2x1xf32, #tpu.memory_space<vmem>>, vector<2x1xf32>
      %38 = tpu.reciprocal %37 : vector<2x1xf32> -> vector<2x1xf32>
      %c0_26 = arith.constant 0 : index
      %c0_27 = arith.constant 0 : index
      %39 = vector.load %arg7[%c0_26, %c0_27] : memref<2x32xf32, #tpu.memory_space<vmem>>, vector<2x32xf32>
      %40 = vector.broadcast %38 : vector<2x1xf32> to vector<2x32xf32>
      %41 = arith.mulf %39, %40 : vector<2x32xf32>
      %c0_28 = arith.constant 0 : index
      %c0_29 = arith.constant 0 : index
      %42 = vector.load %arg4[%c0_28, %c0_29] : memref<2x32xf32, #tpu.memory_space<vmem>>, vector<2x32xf32>
      tpu.vector_store %arg4[%c0_28, %c0_29], %41 {strides = array<i32>} : memref<2x32xf32, #tpu.memory_space<vmem>>, vector<2x32xf32>,
    } else {
    }
    return
  }
  func.func @transform_0(%arg0: i32, %arg1: i32) -> (i32, i32, i32) {
    %c0_i32 = arith.constant 0 : i32
    %c0_i32_0 = arith.constant 0 : i32
    return %arg0, %arg1, %c0_i32 : i32, i32, i32
  }
  func.func @transform_1(%arg0: i32, %arg1: i32) -> (i32, i32) {
    %c0_i32 = arith.constant 0 : i32
    %c0_i32_0 = arith.constant 0 : i32
    %c0_i32_1 = arith.constant 0 : i32
    return %c0_i32, %c0_i32_0 : i32, i32
  }
  func.func @transform_2(%arg0: i32, %arg1: i32) -> (i32, i32) {
    %c0_i32 = arith.constant 0 : i32
    %c0_i32_0 = arith.constant 0 : i32
    return %arg0, %c0_i32 : i32, i32
  }
}

</mosaic_0001>

<bundles_post_ra>
// kernel: tpu_custom_call.1
= control target key start
LH: loop header
LB: loop body
LE: loop exit
PB: predicated region body
PF: predicated region fallthrough
CT: control target
= control target key end

     0   :  { %7 = vsyncpa [#allocation6], 0  ;;  %s367_s0 = inlined_call_operand.hbm [shape: f32[2,8,32], index: 0, kind: input, shape index: {}]   ;;  %s368_s1 = inlined_call_operand.hbm [shape: f32[1,32], index: 1, kind: input, shape index: {}]   ;;  %s369_s2 = inlined_call_operand.hbm [shape: f32[2,32], index: 2, kind: output, shape index: {}]  }
   0x1   :  { %8 = vsyncpa [#allocation9], 0 }
   0x2   :  { %9 = vsyncpa [#allocation7], 0  ;;  %s14_s11 = sshll.u32 %s367_s0, 4  ;;  %s323_s12 = smov [#allocation5]   ;;  %s15_s11 = int_to_ptr.hbm [resolvable:$true] %s14_s11 }
   0x3   :  { %s16_s13 = sshll.u32 %s323_s12, 4  ;;  %s28_s16 = sshll.u32 %s368_s1, 4  ;;  %s17_s13 = int_to_ptr.vmem [resolvable:$true] %s16_s13  ;;  %s29_s16 = int_to_ptr.hbm [resolvable:$true] %s28_s16 }
   0x4   :  { %s324_s17 = smov 128   ;;  %s325_s18 = smov 8  }
   0x5   :  { %22 = dma.hbm_to_vmem [thread:$0]  %s15_s11, 256, %s17_s13, [#allocation6], %s324_s17, %s324_s17, %s325_s18  }
   0x6   :  { %s326_s19 = smov [#allocation8]  }
   0x7   :  { %s30_s20 = sshll.u32 %s326_s19, 4  ;;  %s31_s20 = int_to_ptr.vmem [resolvable:$true] %s30_s20 }
   0x8   :  { %33 = dma.hbm_to_vmem [thread:$0]  %s29_s16, 16, %s31_s20, [#allocation9]  }
   0x9   :  { %317 = dma.done.wait [#allocation6], 256  }
   0xa   :  { %318 = vsyncadd [#allocation6], 4294967040 }
   0xb   :  { %319 = dma.done.wait [#allocation9], 16  }
   0xc   :  { %320 = vsyncadd [#allocation9], 4294967280  ;;  %v51_v0 = vld [vmem:[#allocation5] sm:$0xff]  ;;  %v236_v1 = vld [vmem:[#allocation8] ss:$0 sm:$0xff]  ;;  %vm59_vm0 = vcmask 261120   ;;  %v68_v9 = vlaneseq }
   0xd   :  { %v52_v2 = vld [vmem:[#allocation5 + $0x8] sm:$0xff]  ;;  %136 = vmatpush.msra.mxu0 %v51_v0  ;;  %v57_v3 = vmul.f32 %v236_v1, %v51_v0  ;;  %vm46_vm1 = vcmask 1024   ;;  %v327_v7 = vmov -inf   ;;  %vm72_vm2 = vcmask 1041409   ;;  %s330_s0 = smov [#allocation10]   ;;  %s212_s23 = sshll.u32 %s369_s2, 4  ;;  %s213_s23 = int_to_ptr.hbm [resolvable:$true] %s212_s23 }
   0xe   :  { %158 = vmatpush.msra.mxu1 %v52_v2  ;;  %v58_v5 = vmul.f32 %v236_v1, %v52_v2  ;;  %47 = vst.msk [vmem:[#allocation2] sm:$0x3] %vm46_vm1, %v327_v7  ;;  %v69_v10 = vand.u32 127, %v68_v9  ;;  %vm75_vm3 = vcmask 58368   ;;  %v328_v16 = vmov 0   ;;  %s210_s1 = sshll.u32 %s330_s0, 4  ;;  %s211_s1 = int_to_ptr.vmem [resolvable:$true] %s210_s1 }
   0xf   :  { %v60_v4 = vsel %vm59_vm0, %v57_v3, 0.0  ;;  %233 = vset.pattern.permute.xlu1 %v328_v16  ;;  %234 = vset.pattern.permute.xlu2 %v328_v16  ;;  %v329_v17 = vmov 0.0   ;;  %vm49_vm4 = vcmask 254976   ;;  %vm118_vm5 = vcmask 64512  }
  0x10   :  { %61 = vadd.xlane.f32.xlu0 %v60_v4  ;;  %v63_v6 = vsel %vm59_vm0, %v58_v5, 0.0  ;;  %48 = vst.msk [vmem:[#allocation3] sm:$0x3] %vm46_vm1, %v329_v17 }
  0x11   :  { %235 = vset.pattern.permute.xlu0 %v328_v16  ;;  %50 = vst.msk [vmem:[#allocation4] sm:$0x3] %vm49_vm4, %v329_v17 }
  0x15   :  { %v79_v18 = vld [vmem:[#allocation2] sm:$0x3] }
  0x17   :  { %v98_v39 = vld [vmem:[#allocation3] sm:$0x3] }
  0x18   :  { %64 = vadd.xlane.f32.xlu0 %v63_v6  ;;  %v163_v44 = vld [vmem:[#allocation4] sm:$0x3] }
  0x83   :  { %v62_v8 = vpop.xlane.xlu0 %61 }
  0x84   :  { %v70_v12 = vperm.slane %v62_v8, %v69_v10 }
  0x8b   :  { %v65_v11 = vpop.xlane.xlu0 %64 }
  0x8c   :  { %v71_v13 = vperm.slane %v65_v11, %v69_v10 }
  0x8e   :  { %v73_v14 = vsel %vm72_vm2, %v71_v13, %v70_v12 }
  0x8f   :  { %v76_v15 = vsel %vm75_vm3, %v73_v14, -inf }
  0x90   :  { %77 = vmax.xlane.f32.xlu1 %v76_v15 }
 0x103   :  { %v78_v19 = vpop.xlane.xlu1 %77 }
 0x104   :  { %v80_v20 = vmax.f32 %v79_v18, %v78_v19 }
 0x106   :  { %v81_v21 = vsub.f32 %v79_v18, %v80_v20  ;;  %178 = vst.msk [vmem:[#allocation2] sm:$0x3] %vm46_vm1, %v80_v20  ;;  %86 = vperm.xlu1 %233, %v80_v20  }
 0x108   :  { %v82_v30 = vmul.f32 1.442695, %v81_v21 }
 0x178   :  { %v87_v22 = vpop.permute.xlu1 %86 }
 0x179   :  { %v89_v23 = vperm.slane %v87_v22, 1  ;;  %v88_v25 = vperm.slane %v87_v22, 0 }
 0x17b   :  { %v93_v24 = vsub.f32 %v65_v11, %v89_v23  ;;  %v92_v27 = vsub.f32 %v62_v8, %v88_v25 }
 0x17d   :  { %v96_v26 = vmul.f32 1.442695, %v93_v24  ;;  %v94_v28 = vmul.f32 1.442695, %v92_v27 }
 0x17f   :  { %237 = vpow2.f32 %v96_v26 }
 0x180   :  { %239 = vpow2.f32 %v94_v28 }
 0x181   :  { %241 = vpow2.f32 %v82_v30 }
 0x185   :  { %v238_v29 = vpop.eup %237 }
 0x186   :  { %106 = vperm.xlu2 %234, %v238_v29   ;;  %v240_v31 = vpop.eup %239 }
 0x187   :  { %v242_v32 = vpop.eup %241 }
 0x188   :  { %v99_v40 = vmul.f32 %v242_v32, %v98_v39 }
 0x18e   :  { %103 = vperm.xlu2 %234, %v240_v31  }
 0x196   :  { %166 = vperm.xlu2 %234, %v242_v32  }
 0x1e0   :  { %v107_v33 = vpop.permute.xlu2 %106 }
 0x1e1   :  { %v109_v34 = vperm.slane %v107_v33, %v69_v10 }
 0x1e3   :  { %224 = vmatmul.msk.f32.vlgmr.msra.gmra.mxu1 %vm118_vm5, %v109_v34 }
 0x1e8   :  { %v104_v35 = vpop.permute.xlu2 %103 }
 0x1e9   :  { %v108_v36 = vperm.slane %v104_v35, %v69_v10 }
 0x1eb   :  { %223 = vmatmul.msk.f32.vlgmr.msra.gmra.mxu0 %vm118_vm5, %v108_v36  ;;  %v110_v37 = vsel %vm72_vm2, %v109_v34, %v108_v36 }
 0x1ec   :  { %v112_v38 = vsel %vm75_vm3, %v110_v37, 0.0 }
 0x1ed   :  { %113 = vadd.xlane.f32.xlu0 %v112_v38 }
 0x1f0   :  { %v167_v45 = vpop.permute.xlu2 %166 }
 0x1f1   :  { %v169_v47 = vmul.f32 %v167_v45, %v163_v44 }
 0x260   :  { %v114_v41 = vpop.xlane.xlu0 %113  ;;  %v160_v43 = vpop.f32.mrf.mxu1 }
 0x261   :  { %v115_v42 = vadd.f32 %v114_v41, %v99_v40  ;;  %v172_v46 = vrot.slane %v160_v43, 7 }
 0x263   :  { %117 = vst.msk [vmem:[#allocation3] sm:$0x3] %vm46_vm1, %v115_v42 }
 0x268   :  { %v138_v48 = vpop.f32.mrf.mxu0 }
 0x269   :  { %v173_v49 = vsel %vm72_vm2, %v172_v46, %v138_v48 }
 0x26a   :  { %v175_v50 = vadd.f32 %v173_v49, %v169_v47  ;;  %v182_v51 = vld [vmem:[#allocation3] sm:$0x3] }
 0x26b   :  { %243 = vrcp.f32 %v182_v51  ;;  %v194_v55 = vand.u32 2147483648, %v182_v51  ;;  %v192_v57 = vand.u32 2147483647, %v182_v51  ;;  %vm188_vm7 = vweird.f32 %v182_v51 }
 0x26c   :  { %177 = vst.msk [vmem:[#allocation4] sm:$0x3] %vm49_vm4, %v175_v50 }
 0x26d   :  { %v195_v59 = vor.u32 1.1754944e-38, %v194_v55  ;;  %vm193_vm9 = vcmp.eq.f32.partialorder %v192_v57, 8.507059e+37 }
 0x271   :  { %v244_v52 = vpop.eup %243 }
 0x272   :  { %v184_v53 = vmul.f32 %v244_v52, %v182_v51  ;;  %vm189_vm6 = vweird.f32 %v244_v52 }
 0x273   :  { %vm190_vm8 = vmor %vm188_vm7, %vm189_vm6  ;;  %v197_v62 = vld [vmem:[#allocation4] sm:$0x3] }
 0x274   :  { %v185_v54 = vsub.f32 1.0, %v184_v53 }
 0x276   :  { %v186_v56 = vmul.f32 %v244_v52, %v185_v54 }
 0x278   :  { %v187_v58 = vadd.f32 %v244_v52, %v186_v56 }
 0x27a   :  { %v191_v60 = vsel %vm190_vm8, %v244_v52, %v187_v58 }
 0x27b   :  { %v196_v61 = vsel %vm193_vm9, %v195_v59, %v191_v60 }
 0x27c   :  { %200 = vperm.xlu0 %235, %v196_v61  }
 0x2ee   :  { %v201_v63 = vpop.permute.xlu0 %200 }
 0x2ef   :  { %v203_v0 = vmul.f32 %v201_v63, %v197_v62 }
 0x2f1   :  { %204 = vst.msk [vmem:[#allocation10] sm:$0x3] %vm49_vm4, %v203_v0 }
 0x2f2   :  { %215 = dma.vmem_to_hbm [thread:$0]  %s211_s1, 32, %s213_s23, [#allocation7]  }
 0x2f3   :  { %321 = dma.done.wait [#allocation7], 32  }
 0x2f4   :  { %322 = vsyncadd [#allocation7], 4294967264 }
 0x2f5   :  { %220 = vsyncpa [#allocation6], 1 }
 0x2f6   :  { %221 = vsyncpa [#allocation9], 1 }
 0x2f7   :  { %222 = vsyncpa [#allocation7], 1 }

</bundles_post_ra>
